<compile_context>
chip_gen: v5e
topology: v5e:2x2
jax: 0.10.0
libtpu: 0.0.40
codegen_flags: <defaults>
</compile_context>

<pallas_src>
import jax
import jax.numpy as jnp
from jax.experimental import pallas as pl
from jax.experimental.pallas import tpu as pltpu


def _decoder_kernel(x_ref, w1_ref, b1_ref, w2_ref, b2_ref, o_ref):
    # One grid step == one tile of fused rows.
    x = x_ref[...]                                                    # (br, L)
    h = jnp.dot(x, w1_ref[...], preferred_element_type=jnp.float32) + b1_ref[...]
    h = jnp.maximum(h, 0.0)                                           # (br, L//2)
    y = jnp.dot(h, w2_ref[...], preferred_element_type=jnp.float32) + b2_ref[...]
    o_ref[...] = y.astype(o_ref.dtype)                                # (br, O)


def _round_up(x, m):
    return ((x + m - 1) // m) * m


def decoder_forward(data, params, *, block_rows=4096):
    """data: (..., latent_dim) -> (..., output_dim)."""
    w1, b1, w2, b2 = params["w1"], params["b1"], params["w2"], params["b2"]
    L = w1.shape[0]
    O = w2.shape[1]
    assert data.shape[-1] == L, "last dim of data must be latent_dim"

    lead_shape = data.shape[:-1]
    x2d = data.reshape(-1, L)                 # fuse all leading dims into rows
    rows = x2d.shape[0]

    if rows == 0:                             # empty-input guard
        return jnp.zeros((*lead_shape, O), data.dtype)

    # Row tile: at most `block_rows`, always a multiple of 8 (sublane-aligned).
    br = min(block_rows, _round_up(rows, 8))
    br = _round_up(br, 8)
    # Megacore shaping (v7x has 2 TensorCores): for large inputs keep >= 2
    # parallel grid steps so one core never sits idle.
    if rows >= 2048 and pl.cdiv(rows, br) < 2:
        br = min(br, _round_up(pl.cdiv(rows, 2), 8))
    grid = (pl.cdiv(rows, br),)               # ragged last block is masked by Pallas

    full = lambda a: pl.BlockSpec(a.shape, lambda i, _nd=a.ndim: (0,) * _nd)

    out2d = pl.pallas_call(
        _decoder_kernel,
        out_shape=jax.ShapeDtypeStruct((rows, O), data.dtype),
        grid_spec=pltpu.PrefetchScalarGridSpec(
            num_scalar_prefetch=0,
            grid=grid,
            in_specs=[
                pl.BlockSpec((br, L), lambda i: (i, 0)),   # fused rows of data
                full(w1), full(b1), full(w2), full(b2),    # resident weights/biases
            ],
            out_specs=pl.BlockSpec((br, O), lambda i: (i, 0)),
        ),
        compiler_params=pltpu.CompilerParams(
            dimension_semantics=("parallel",),
            vmem_limit_bytes=32 * 1024 * 1024,
        ),
    )(x2d, w1, b1, w2, b2)

    return out2d.reshape(*lead_shape, O)


def init_params(key, latent_dim, output_dim):
    """Mirrors utils.init_network_weights: normal(std=0.1) weights, zero biases.
    Weights stored transposed (in_features, out_features) for row-major matmul."""
    hidden = latent_dim // 2
    k1, k2 = jax.random.split(key)
    std = 0.1
    return {
        "w1": jax.random.normal(k1, (latent_dim, hidden), jnp.float32) * std,
        "b1": jnp.zeros((1, hidden), jnp.float32),
        "w2": jax.random.normal(k2, (hidden, output_dim), jnp.float32) * std,
        "b2": jnp.zeros((1, output_dim), jnp.float32),
    }


def _reference_forward(data, params):
    h = jnp.maximum(data @ params["w1"] + params["b1"], 0.0)
    return h @ params["w2"] + params["b2"]


if __name__ == "__main__":
    key = jax.random.PRNGKey(0)
    k_x, k_p, k_x2 = jax.random.split(key, 3)

    # Small shapes consistent with the module: data = (batch, seq, latent_dim).
    batch, seq, latent_dim, output_dim = 2, 8, 32, 16
    params = init_params(k_p, latent_dim, output_dim)

    data = jax.random.normal(k_x, (batch, seq, latent_dim), jnp.float32)
    out = decoder_forward(data, params)
    jax.block_until_ready(out)
    assert out.shape == (batch, seq, output_dim)
    ref = _reference_forward(data, params)
    assert jnp.allclose(out, ref, atol=1e-5, rtol=1e-5)

    # Ragged row count (not a multiple of the 8-row tile) exercises the
    # no-pad / masked-last-block path.
    data2 = jax.random.normal(k_x2, (3, 7, 5, latent_dim), jnp.float32)
    out2 = decoder_forward(data2, params)
    jax.block_until_ready(out2)
    assert out2.shape == (3, 7, 5, output_dim)
    ref2 = _reference_forward(data2, params)
    assert jnp.allclose(out2, ref2, atol=1e-5, rtol=1e-5)

    print("KERNEL_OK")
</pallas_src>

<mosaic_0001>
module attributes {stable_mosaic.version = 11 : i64} {
  func.func @_decoder_kernel(%arg0: i32, %arg1: memref<16x32xf32, #tpu.memory_space<vmem>>, %arg2: memref<32x16xf32, #tpu.memory_space<vmem>>, %arg3: memref<1x16xf32, #tpu.memory_space<vmem>>, %arg4: memref<16x16xf32, #tpu.memory_space<vmem>>, %arg5: memref<1x16xf32, #tpu.memory_space<vmem>>, %arg6: memref<16x16xf32, #tpu.memory_space<vmem>>) attributes {dimension_semantics = [#tpu.dimension_semantics<parallel>], iteration_bounds = array<i64: 1>, scalar_prefetch = 0 : i64, scratch_operands = 0 : i64, tpu.core_type = #tpu.core_type<tc>, window_params = [{transform_indices = @transform_0, window_bounds = array<i64: 16, 32>}, {pipeline_mode = #tpu.pipeline_mode<synchronous>, transform_indices = @transform_1, window_bounds = array<i64: 32, 16>}, {pipeline_mode = #tpu.pipeline_mode<synchronous>, transform_indices = @transform_2, window_bounds = array<i64: 1, 16>}, {pipeline_mode = #tpu.pipeline_mode<synchronous>, transform_indices = @transform_3, window_bounds = array<i64: 16, 16>}, {pipeline_mode = #tpu.pipeline_mode<synchronous>, transform_indices = @transform_4, window_bounds = array<i64: 1, 16>}, {transform_indices = @transform_5, window_bounds = array<i64: 16, 16>}]} {
    %c0 = arith.constant 0 : index
    %c0_0 = arith.constant 0 : index
    %0 = vector.load %arg1[%c0, %c0_0] : memref<16x32xf32, #tpu.memory_space<vmem>>, vector<16x32xf32>
    %c0_1 = arith.constant 0 : index
    %c0_2 = arith.constant 0 : index
    %1 = vector.load %arg2[%c0_1, %c0_2] : memref<32x16xf32, #tpu.memory_space<vmem>>, vector<32x16xf32>
    %cst = arith.constant dense<0.000000e+00> : vector<16x16xf32>
    %2 = tpu.matmul %0, %1, %cst {dimension_numbers = #tpu.dot_dimension_numbers<[1], [0], [0], [1], [0, 0, 1, 1], [], []>} : vector<16x32xf32>, vector<32x16xf32>, vector<16x16xf32> -> vector<16x16xf32>
    %c0_3 = arith.constant 0 : index
    %c0_4 = arith.constant 0 : index
    %3 = vector.load %arg3[%c0_3, %c0_4] : memref<1x16xf32, #tpu.memory_space<vmem>>, vector<1x16xf32>
    %4 = vector.broadcast %3 : vector<1x16xf32> to vector<16x16xf32>
    %5 = arith.addf %2, %4 : vector<16x16xf32>
    %cst_5 = arith.constant 0.000000e+00 : f32
    %6 = vector.broadcast %cst_5 : f32 to vector<16x16xf32>
    %7 = arith.maximumf %5, %6 : vector<16x16xf32>
    %c0_6 = arith.constant 0 : index
    %c0_7 = arith.constant 0 : index
    %8 = vector.load %arg4[%c0_6, %c0_7] : memref<16x16xf32, #tpu.memory_space<vmem>>, vector<16x16xf32>
    %cst_8 = arith.constant dense<0.000000e+00> : vector<16x16xf32>
    %9 = tpu.matmul %7, %8, %cst_8 {dimension_numbers = #tpu.dot_dimension_numbers<[1], [0], [0], [1], [0, 0, 1, 1], [], []>} : vector<16x16xf32>, vector<16x16xf32>, vector<16x16xf32> -> vector<16x16xf32>
    %c0_9 = arith.constant 0 : index
    %c0_10 = arith.constant 0 : index
    %10 = vector.load %arg5[%c0_9, %c0_10] : memref<1x16xf32, #tpu.memory_space<vmem>>, vector<1x16xf32>
    %11 = vector.broadcast %10 : vector<1x16xf32> to vector<16x16xf32>
    %12 = arith.addf %9, %11 : vector<16x16xf32>
    %c0_11 = arith.constant 0 : index
    %c0_12 = arith.constant 0 : index
    %13 = vector.load %arg6[%c0_11, %c0_12] : memref<16x16xf32, #tpu.memory_space<vmem>>, vector<16x16xf32>
    tpu.vector_store %arg6[%c0_11, %c0_12], %12 {strides = array<i32>} : memref<16x16xf32, #tpu.memory_space<vmem>>, vector<16x16xf32>,
    return
  }
  func.func @transform_0(%arg0: i32) -> (i32, i32) {
    %c0_i32 = arith.constant 0 : i32
    %c0_i32_0 = arith.constant 0 : i32
    return %arg0, %c0_i32 : i32, i32
  }
  func.func @transform_1(%arg0: i32) -> (i32, i32) {
    %c0_i32 = arith.constant 0 : i32
    %c0_i32_0 = arith.constant 0 : i32
    %c0_i32_1 = arith.constant 0 : i32
    return %c0_i32, %c0_i32_0 : i32, i32
  }
  func.func @transform_2(%arg0: i32) -> (i32, i32) {
    %c0_i32 = arith.constant 0 : i32
    %c0_i32_0 = arith.constant 0 : i32
    %c0_i32_1 = arith.constant 0 : i32
    return %c0_i32, %c0_i32_0 : i32, i32
  }
  func.func @transform_3(%arg0: i32) -> (i32, i32) {
    %c0_i32 = arith.constant 0 : i32
    %c0_i32_0 = arith.constant 0 : i32
    %c0_i32_1 = arith.constant 0 : i32
    return %c0_i32, %c0_i32_0 : i32, i32
  }
  func.func @transform_4(%arg0: i32) -> (i32, i32) {
    %c0_i32 = arith.constant 0 : i32
    %c0_i32_0 = arith.constant 0 : i32
    %c0_i32_1 = arith.constant 0 : i32
    return %c0_i32, %c0_i32_0 : i32, i32
  }
  func.func @transform_5(%arg0: i32) -> (i32, i32) {
    %c0_i32 = arith.constant 0 : i32
    %c0_i32_0 = arith.constant 0 : i32
    return %arg0, %c0_i32 : i32, i32
  }
}

</mosaic_0001>

<bundles_post_ra>
// kernel: tpu_custom_call.1
= control target key start
LH: loop header
LB: loop body
LE: loop exit
PB: predicated region body
PF: predicated region fallthrough
CT: control target
= control target key end

     0   :  { %s230_s0 = inlined_call_operand.vmem [shape: f32[16,32], index: 0, kind: input, shape index: {}]   ;;  %s231_s1 = inlined_call_operand.vmem [shape: f32[32,16], index: 1, kind: input, shape index: {}]   ;;  %s232_s2 = inlined_call_operand.vmem [shape: f32[1,16], index: 2, kind: input, shape index: {}]   ;;  %s233_s3 = inlined_call_operand.vmem [shape: f32[16,16], index: 3, kind: input, shape index: {}]   ;;  %s234_s4 = inlined_call_operand.vmem [shape: f32[1,16], index: 4, kind: input, shape index: {}]   ;;  %s235_s5 = inlined_call_operand.hbm [shape: f32[16,16], index: 5, kind: output, shape index: {}]  }
   0x1   :  { %v26_v0 = vld [vmem:[%s231_s1 + $0x18] sm:$0xff]  ;;  %v25_v1 = vld [vmem:[%s231_s1 + $0x10] sm:$0xff]  ;;  %v24_v2 = vld [vmem:[%s231_s1 + $0x8] sm:$0xff] }
   0x2   :  { %123 = vmatpush.msra.mxu2 %v26_v0  ;;  %50 = vmatpush.msra.mxu0 %v26_v0 }
   0x4   :  { %124 = vmatpush.msra.mxu2 %v25_v1  ;;  %51 = vmatpush.msra.mxu0 %v25_v1 }
   0x5   :  { %10 = vsyncpa [#allocation3], 0  ;;  %v23_v3 = vld [vmem:[%s231_s1] sm:$0xff]  ;;  %v22_v4 = vld [vmem:[%s230_s0 + $0x8] sm:$0xff]  ;;  %vm31_vm0 = vcmask 261120   ;;  %vm69_vm1 = vcmask 130048  }
   0x6   :  { %125 = vmatpush.msra.mxu2 %v24_v2  ;;  %52 = vmatpush.msra.mxu0 %v24_v2  ;;  %v21_v5 = vld [vmem:[%s230_s0] sm:$0xff]  ;;  %v64_v6 = vld [vmem:[%s233_s3 + $0x8] sm:$0xff]  ;;  %s107_s13 = sshll.u32 %s235_s5, 4  ;;  %s161_s14 = smov 128   ;;  %s108_s13 = int_to_ptr.hbm [resolvable:$true] %s107_s13 }
   0x7   :  { %127 = vmatpush.msra.mxu3 %v64_v6  ;;  %90 = vmatpush.msra.mxu1 %v64_v6  ;;  %v63_v7 = vld [vmem:[%s233_s3] sm:$0xff]  ;;  %s162_s15 = smov 8  }
   0x8   :  { %126 = vmatpush.msra.mxu2 %v23_v3  ;;  %53 = vmatpush.msra.mxu0 %v23_v3  ;;  %v132_v8 = vld [vmem:[%s232_s2] ss:$0 sm:$0xff]  ;;  %s160_s2 = smov [#allocation2]  }
   0x9   :  { %120 = vmatmul.msk.f32.vlgmr.msra.gmra.mxu2 %vm31_vm0, %v22_v4  ;;  %119 = vmatmul.msk.f32.vlgmr.msra.gmra.mxu0 %vm31_vm0, %v21_v5  ;;  %v133_v15 = vld [vmem:[%s234_s4] ss:$0 sm:$0xff]  ;;  %s105_s3 = sshll.u32 %s160_s2, 4  ;;  %s106_s3 = int_to_ptr.vmem [resolvable:$true] %s105_s3 }
   0xa   :  { %128 = vmatpush.msra.mxu3 %v63_v7  ;;  %91 = vmatpush.msra.mxu1 %v63_v7 }
  0x86   :  { %v55_v9 = vpop.f32.mrf.mxu0 }
  0x87   :  { %v56_v10 = vadd.f32 %v132_v8, %v55_v9 }
  0x89   :  { %v61_v11 = vmax.f32 %v56_v10, 0.0 }
  0x8b   :  { %121 = vmatmul.msk.f32.vlgmr.msra.gmra.mxu1 %vm69_vm1, %v61_v11 }
  0x8c   :  { %v58_v12 = vpop.f32.mrf.mxu2 }
  0x8d   :  { %v59_v13 = vadd.f32 %v132_v8, %v58_v12 }
  0x8f   :  { %v62_v14 = vmax.f32 %v59_v13, 0.0 }
  0x91   :  { %122 = vmatmul.msk.f32.vlgmr.msra.gmra.mxu3 %vm69_vm1, %v62_v14 }
 0x108   :  { %v93_v16 = vpop.f32.mrf.mxu1 }
 0x109   :  { %v94_v17 = vadd.f32 %v133_v15, %v93_v16 }
 0x10b   :  { %99 = vst.msk [vmem:[#allocation2] sm:$0xff] %vm69_vm1, %v94_v17 }
 0x114   :  { %v96_v18 = vpop.f32.mrf.mxu3 }
 0x115   :  { %v97_v19 = vadd.f32 %v133_v15, %v96_v18 }
 0x117   :  { %100 = vst.msk [vmem:[#allocation2 + $0x8] sm:$0xff] %vm69_vm1, %v97_v19 }
 0x118   :  { %113 = dma.vmem_to_hbm [thread:$0]  %s106_s3, 256, %s108_s13, [#allocation3], %s161_s14, %s161_s14, %s162_s15  }
 0x119   :  { %158 = dma.done.wait [#allocation3], 256  }
 0x11a   :  { %159 = vsyncadd [#allocation3], 4294967040 }
 0x11b   :  { %118 = vsyncpa [#allocation3], 1 }

</bundles_post_ra>
